<compile_context>
chip_gen: v6e
topology: v6e:2x2x1
jax: 0.10.0
libtpu: 0.0.40
codegen_flags: <defaults>
</compile_context>

<pallas_src>
import functools

import jax
import jax.numpy as jnp
from jax import lax
from jax.experimental import pallas as pl
from jax.experimental.pallas import tpu as pltpu


def _beep_kernel(ints_ref, m_ref, out_ref, *, B, L, V, D):
    # ints: (B, L+2) int32 -> tokens (B,L) ++ [bias_label, hate_label]
    ints = ints_ref[...]
    tokens = ints[:, :L]                                            # (B, L)
    labels = ints[:, L:L + 2]                                       # (B, 2)

    # Token counts per vocab id, plus a trailing ones-column so the fused bias
    # row of M_aug is picked up by the same matmul.
    # TODO(synk): at realistic vocab sizes replace this one-hot/count path with a
    # gather or manual-DMA embedding lookup (VMEM cost here is ~4*B*L*V bytes).
    vi = lax.broadcasted_iota(jnp.int32, (B, L, V + 1), 2)          # (B, L, V+1)
    counts = jnp.sum((tokens[:, :, None] == vi).astype(jnp.float32), axis=1)  # (B, V+1)
    col = lax.broadcasted_iota(jnp.int32, (B, V + 1), 1)
    counts = counts + (col == V).astype(jnp.float32)                # ones column at V

    # Single fused MXU matmul: both heads' logits (+ L*bias) at once.
    fused = jnp.dot(counts, m_ref[...],
                    preferred_element_type=jnp.float32)             # (B, 2D)

    cls_iota = lax.broadcasted_iota(jnp.int32, (B, D), 1)           # (B, D)

    def head(logits, lab):                                          # logits (B,D), lab (B,1)
        mx = jnp.max(logits, axis=-1, keepdims=True)                # (B, 1)
        lse = jnp.log(jnp.sum(jnp.exp(logits - mx), axis=-1, keepdims=True)) + mx
        picked = jnp.sum(logits * (cls_iota == lab).astype(jnp.float32),
                         axis=-1, keepdims=True)                    # (B, 1)
        loss = jnp.sum(lse - picked, axis=0, keepdims=True) * (1.0 / B)   # (1, 1)
        # argmax over classes (first occurrence on ties), carried as exact f32
        pred = jnp.min(jnp.where(logits == mx, cls_iota, D),
                       axis=-1, keepdims=True).astype(jnp.float32)  # (B, 1)
        return loss, pred

    bias_loss, bias_pred = head(fused[:, :D], labels[:, 0:1])
    hate_loss, hate_pred = head(fused[:, D:2 * D], labels[:, 1:2])

    # Pack everything into one lane-dense slab:
    #   lane 0: bias_pred, lane 1: hate_pred, lane 2: bias_loss, lane 3: hate_loss
    lane = lax.broadcasted_iota(jnp.int32, (B, 128), 1)
    slab = jnp.where(lane == 0, bias_pred, 0.0)
    slab = jnp.where(lane == 1, hate_pred, slab)
    slab = jnp.where(lane == 2, bias_loss, slab)
    slab = jnp.where(lane == 3, hate_loss, slab)
    out_ref[...] = slab


def beep_forward(feature, bias, hate, params):
    """feature: (B, L) int tokens; bias/hate: (B,) int labels in [0, D)."""
    B, L = feature.shape
    emb = params["embedding"]                                        # (V, D)
    V, D = emb.shape

    # Pre-fuse the constant weight chain (pure parameter prep, done once by XLA):
    #   M_aug = [ emb @ [Wb^T | Wh^T] ;  L*[bb | bh] ]  -> (V+1, 2D)
    wT = jnp.concatenate([params["bias_w"].T, params["hate_w"].T], axis=1)   # (D, 2D)
    b_row = (jnp.concatenate([params["bias_b"], params["hate_b"]]) * L)[None, :]
    m_aug = jnp.concatenate([emb @ wT, b_row], axis=0).astype(jnp.float32)   # (V+1, 2D)

    # One consolidated int32 input: tokens ++ both labels.
    ints = jnp.concatenate(
        [feature.astype(jnp.int32),
         bias.astype(jnp.int32)[:, None],
         hate.astype(jnp.int32)[:, None]], axis=1)                   # (B, L+2)

    vmem = pl.BlockSpec(memory_space=pltpu.MemorySpace.VMEM)
    kernel = functools.partial(_beep_kernel, B=B, L=L, V=V, D=D)

    slab = pl.pallas_call(
        kernel,
        out_shape=jax.ShapeDtypeStruct((B, 128), jnp.float32),
        in_specs=[vmem, vmem],
        out_specs=vmem,
    )(ints, m_aug)

    bias_pred = slab[:, 0].astype(jnp.int32)
    hate_pred = slab[:, 1].astype(jnp.int32)
    return slab[0, 2], slab[0, 3], bias_pred, hate_pred


def _reference(feature, bias, hate, params):
    emb = params["embedding"][feature]                               # (B, L, D)

    def head(w, b, lab):
        out = jnp.sum(emb @ w.T + b, axis=1)                         # (B, D)
        lse = jax.nn.logsumexp(out, axis=-1)
        picked = jnp.take_along_axis(out, lab[:, None], axis=-1)[:, 0]
        return jnp.mean(lse - picked), jnp.argmax(out, axis=-1)

    bl, bp = head(params["bias_w"], params["bias_b"], bias)
    hl, hp = head(params["hate_w"], params["hate_b"], hate)
    return bl, hl, bp, hp


if __name__ == "__main__":
    key = jax.random.PRNGKey(0)
    k_emb, k_bw, k_bb, k_hw, k_hb, k_tok, k_blab, k_hlab = jax.random.split(key, 8)

    B, L, V, D = 2, 8, 11, 3
    pad_token_id = 0

    # Deterministic parameter init (shapes from the module's __init__).
    emb_table = jax.random.normal(k_emb, (V, D), dtype=jnp.float32)
    emb_table = emb_table.at[pad_token_id].set(0.0)                  # padding_idx row = 0
    bound = 1.0 / jnp.sqrt(3.0)
    params = {
        "embedding": emb_table,
        "bias_w": jax.random.uniform(k_bw, (D, D), jnp.float32, -bound, bound),
        "bias_b": jax.random.uniform(k_bb, (D,), jnp.float32, -bound, bound),
        "hate_w": jax.random.uniform(k_hw, (D, D), jnp.float32, -bound, bound),
        "hate_b": jax.random.uniform(k_hb, (D,), jnp.float32, -bound, bound),
    }

    feature = jax.random.randint(k_tok, (B, L), 0, V, dtype=jnp.int32)
    bias_labels = jax.random.randint(k_blab, (B,), 0, D, dtype=jnp.int32)
    hate_labels = jax.random.randint(k_hlab, (B,), 0, D, dtype=jnp.int32)

    out = beep_forward(feature, bias_labels, hate_labels, params)
    out = jax.block_until_ready(out)
    bias_loss, hate_loss, bias_pred, hate_pred = out

    # sanity-check against a plain-JAX reference
    rbl, rhl, rbp, rhp = _reference(feature, bias_labels, hate_labels, params)
    assert bias_loss.shape == () and hate_loss.shape == ()
    assert bias_pred.shape == (B,) and hate_pred.shape == (B,)
    assert jnp.allclose(bias_loss, rbl, atol=1e-4)
    assert jnp.allclose(hate_loss, rhl, atol=1e-4)
    assert jnp.array_equal(bias_pred, rbp.astype(jnp.int32))
    assert jnp.array_equal(hate_pred, rhp.astype(jnp.int32))

    print("KERNEL_OK")
</pallas_src>

<mosaic_0001>
module attributes {stable_mosaic.version = 11 : i64} {
  func.func @_beep_kernel(%arg0: memref<2x10xi32, #tpu.memory_space<vmem>>, %arg1: memref<12x6xf32, #tpu.memory_space<vmem>>, %arg2: memref<2x128xf32, #tpu.memory_space<vmem>>) attributes {dimension_semantics = [], scalar_prefetch = 0 : i64, scratch_operands = 0 : i64, tpu.core_type = #tpu.core_type<tc>} {
    %c0 = arith.constant 0 : index
    %c0_0 = arith.constant 0 : index
    %0 = vector.load %arg0[%c0, %c0_0] : memref<2x10xi32, #tpu.memory_space<vmem>>, vector<2x10xi32>
    %1 = vector.extract_strided_slice %0 {offsets = [0, 0], sizes = [2, 8], strides = [1, 1]} : vector<2x10xi32> to vector<2x8xi32>
    %2 = vector.extract_strided_slice %0 {offsets = [0, 8], sizes = [2, 2], strides = [1, 1]} : vector<2x10xi32> to vector<2x2xi32>
    %3 = tpu.iota {dimensions = array<i32: 2>} : vector<2x8x12xi32>
    %4 = vector.shape_cast %1 : vector<2x8xi32> to vector<2x8x1xi32>
    %5 = vector.broadcast %4 : vector<2x8x1xi32> to vector<2x8x12xi32>
    %6 = arith.cmpi eq, %5, %3 : vector<2x8x12xi32>
    %7 = arith.extui %6 : vector<2x8x12xi1> to vector<2x8x12xi32>
    %8 = arith.sitofp %7 : vector<2x8x12xi32> to vector<2x8x12xf32>
    %cst = arith.constant dense<0.000000e+00> : vector<2x12xf32>
    %9 = vector.multi_reduction <add>, %8, %cst [1] : vector<2x8x12xf32> to vector<2x12xf32>
    %10 = tpu.iota {dimensions = array<i32: 1>} : vector<2x12xi32>
    %c11_i32 = arith.constant 11 : i32
    %11 = vector.broadcast %c11_i32 : i32 to vector<2x12xi32>
    %12 = arith.cmpi eq, %10, %11 : vector<2x12xi32>
    %13 = arith.extui %12 : vector<2x12xi1> to vector<2x12xi32>
    %14 = arith.sitofp %13 : vector<2x12xi32> to vector<2x12xf32>
    %15 = arith.addf %9, %14 : vector<2x12xf32>
    %c0_1 = arith.constant 0 : index
    %c0_2 = arith.constant 0 : index
    %16 = vector.load %arg1[%c0_1, %c0_2] : memref<12x6xf32, #tpu.memory_space<vmem>>, vector<12x6xf32>
    %cst_3 = arith.constant dense<0.000000e+00> : vector<2x6xf32>
    %17 = tpu.matmul %15, %16, %cst_3 {dimension_numbers = #tpu.dot_dimension_numbers<[1], [0], [0], [1], [0, 0, 1, 1], [], []>} : vector<2x12xf32>, vector<12x6xf32>, vector<2x6xf32> -> vector<2x6xf32>
    %18 = tpu.iota {dimensions = array<i32: 1>} : vector<2x3xi32>
    %19 = vector.extract_strided_slice %17 {offsets = [0, 0], sizes = [2, 3], strides = [1, 1]} : vector<2x6xf32> to vector<2x3xf32>
    %20 = vector.extract_strided_slice %2 {offsets = [0, 0], sizes = [2, 1], strides = [1, 1]} : vector<2x2xi32> to vector<2x1xi32>
    %cst_4 = arith.constant dense<0xFF800000> : vector<2xf32>
    %21 = vector.multi_reduction <maximumf>, %19, %cst_4 [1] : vector<2x3xf32> to vector<2xf32>
    %22 = vector.shape_cast %21 : vector<2xf32> to vector<2x1xf32>
    %23 = vector.broadcast %22 : vector<2x1xf32> to vector<2x3xf32>
    %24 = arith.subf %19, %23 : vector<2x3xf32>
    %25 = math.exp %24 : vector<2x3xf32>
    %cst_5 = arith.constant dense<0.000000e+00> : vector<2xf32>
    %26 = vector.multi_reduction <add>, %25, %cst_5 [1] : vector<2x3xf32> to vector<2xf32>
    %27 = vector.shape_cast %26 : vector<2xf32> to vector<2x1xf32>
    %28 = math.log %27 : vector<2x1xf32>
    %29 = arith.addf %28, %22 : vector<2x1xf32>
    %30 = vector.broadcast %20 : vector<2x1xi32> to vector<2x3xi32>
    %31 = arith.cmpi eq, %18, %30 : vector<2x3xi32>
    %32 = arith.extui %31 : vector<2x3xi1> to vector<2x3xi32>
    %33 = arith.sitofp %32 : vector<2x3xi32> to vector<2x3xf32>
    %34 = arith.mulf %19, %33 : vector<2x3xf32>
    %cst_6 = arith.constant dense<0.000000e+00> : vector<2xf32>
    %35 = vector.multi_reduction <add>, %34, %cst_6 [1] : vector<2x3xf32> to vector<2xf32>
    %36 = vector.shape_cast %35 : vector<2xf32> to vector<2x1xf32>
    %37 = arith.subf %29, %36 : vector<2x1xf32>
    %cst_7 = arith.constant dense<0.000000e+00> : vector<1xf32>
    %38 = vector.multi_reduction <add>, %37, %cst_7 [0] : vector<2x1xf32> to vector<1xf32>
    %39 = vector.shape_cast %38 : vector<1xf32> to vector<1x1xf32>
    %cst_8 = arith.constant 5.000000e-01 : f32
    %40 = vector.broadcast %cst_8 : f32 to vector<1x1xf32>
    %41 = arith.mulf %39, %40 : vector<1x1xf32>
    %42 = vector.broadcast %22 : vector<2x1xf32> to vector<2x3xf32>
    %43 = arith.cmpf oeq, %19, %42 : vector<2x3xf32>
    %c3_i32 = arith.constant 3 : i32
    %44 = vector.broadcast %c3_i32 : i32 to vector<2x3xi32>
    %45 = arith.select %43, %18, %44 : vector<2x3xi1>, vector<2x3xi32>
    %cst_9 = arith.constant dense<2147483647> : vector<2xi32>
    %46 = vector.multi_reduction <minsi>, %45, %cst_9 [1] : vector<2x3xi32> to vector<2xi32>
    %47 = vector.shape_cast %46 : vector<2xi32> to vector<2x1xi32>
    %48 = arith.sitofp %47 : vector<2x1xi32> to vector<2x1xf32>
    %49 = vector.extract_strided_slice %17 {offsets = [0, 3], sizes = [2, 3], strides = [1, 1]} : vector<2x6xf32> to vector<2x3xf32>
    %50 = vector.extract_strided_slice %2 {offsets = [0, 1], sizes = [2, 1], strides = [1, 1]} : vector<2x2xi32> to vector<2x1xi32>
    %cst_10 = arith.constant dense<0xFF800000> : vector<2xf32>
    %51 = vector.multi_reduction <maximumf>, %49, %cst_10 [1] : vector<2x3xf32> to vector<2xf32>
    %52 = vector.shape_cast %51 : vector<2xf32> to vector<2x1xf32>
    %53 = vector.broadcast %52 : vector<2x1xf32> to vector<2x3xf32>
    %54 = arith.subf %49, %53 : vector<2x3xf32>
    %55 = math.exp %54 : vector<2x3xf32>
    %cst_11 = arith.constant dense<0.000000e+00> : vector<2xf32>
    %56 = vector.multi_reduction <add>, %55, %cst_11 [1] : vector<2x3xf32> to vector<2xf32>
    %57 = vector.shape_cast %56 : vector<2xf32> to vector<2x1xf32>
    %58 = math.log %57 : vector<2x1xf32>
    %59 = arith.addf %58, %52 : vector<2x1xf32>
    %60 = vector.broadcast %50 : vector<2x1xi32> to vector<2x3xi32>
    %61 = arith.cmpi eq, %18, %60 : vector<2x3xi32>
    %62 = arith.extui %61 : vector<2x3xi1> to vector<2x3xi32>
    %63 = arith.sitofp %62 : vector<2x3xi32> to vector<2x3xf32>
    %64 = arith.mulf %49, %63 : vector<2x3xf32>
    %cst_12 = arith.constant dense<0.000000e+00> : vector<2xf32>
    %65 = vector.multi_reduction <add>, %64, %cst_12 [1] : vector<2x3xf32> to vector<2xf32>
    %66 = vector.shape_cast %65 : vector<2xf32> to vector<2x1xf32>
    %67 = arith.subf %59, %66 : vector<2x1xf32>
    %cst_13 = arith.constant dense<0.000000e+00> : vector<1xf32>
    %68 = vector.multi_reduction <add>, %67, %cst_13 [0] : vector<2x1xf32> to vector<1xf32>
    %69 = vector.shape_cast %68 : vector<1xf32> to vector<1x1xf32>
    %cst_14 = arith.constant 5.000000e-01 : f32
    %70 = vector.broadcast %cst_14 : f32 to vector<1x1xf32>
    %71 = arith.mulf %69, %70 : vector<1x1xf32>
    %72 = vector.broadcast %52 : vector<2x1xf32> to vector<2x3xf32>
    %73 = arith.cmpf oeq, %49, %72 : vector<2x3xf32>
    %c3_i32_15 = arith.constant 3 : i32
    %74 = vector.broadcast %c3_i32_15 : i32 to vector<2x3xi32>
    %75 = arith.select %73, %18, %74 : vector<2x3xi1>, vector<2x3xi32>
    %cst_16 = arith.constant dense<2147483647> : vector<2xi32>
    %76 = vector.multi_reduction <minsi>, %75, %cst_16 [1] : vector<2x3xi32> to vector<2xi32>
    %77 = vector.shape_cast %76 : vector<2xi32> to vector<2x1xi32>
    %78 = arith.sitofp %77 : vector<2x1xi32> to vector<2x1xf32>
    %79 = tpu.iota {dimensions = array<i32: 1>} : vector<2x128xi32>
    %c0_i32 = arith.constant 0 : i32
    %80 = vector.broadcast %c0_i32 : i32 to vector<2x128xi32>
    %81 = arith.cmpi eq, %79, %80 : vector<2x128xi32>
    %cst_17 = arith.constant 0.000000e+00 : f32
    %82 = vector.shape_cast %48 : vector<2x1xf32> to vector<2x1xf32>
    %83 = vector.broadcast %82 : vector<2x1xf32> to vector<2x128xf32>
    %84 = vector.broadcast %cst_17 : f32 to vector<2x128xf32>
    %85 = arith.select %81, %83, %84 : vector<2x128xi1>, vector<2x128xf32>
    %c1_i32 = arith.constant 1 : i32
    %86 = vector.broadcast %c1_i32 : i32 to vector<2x128xi32>
    %87 = arith.cmpi eq, %79, %86 : vector<2x128xi32>
    %88 = vector.shape_cast %78 : vector<2x1xf32> to vector<2x1xf32>
    %89 = vector.broadcast %88 : vector<2x1xf32> to vector<2x128xf32>
    %90 = arith.select %87, %89, %85 : vector<2x128xi1>, vector<2x128xf32>
    %c2_i32 = arith.constant 2 : i32
    %91 = vector.broadcast %c2_i32 : i32 to vector<2x128xi32>
    %92 = arith.cmpi eq, %79, %91 : vector<2x128xi32>
    %93 = vector.shape_cast %41 : vector<1x1xf32> to vector<1x1xf32>
    %94 = vector.broadcast %93 : vector<1x1xf32> to vector<2x128xf32>
    %95 = arith.select %92, %94, %90 : vector<2x128xi1>, vector<2x128xf32>
    %c3_i32_18 = arith.constant 3 : i32
    %96 = vector.broadcast %c3_i32_18 : i32 to vector<2x128xi32>
    %97 = arith.cmpi eq, %79, %96 : vector<2x128xi32>
    %98 = vector.shape_cast %71 : vector<1x1xf32> to vector<1x1xf32>
    %99 = vector.broadcast %98 : vector<1x1xf32> to vector<2x128xf32>
    %100 = arith.select %97, %99, %95 : vector<2x128xi1>, vector<2x128xf32>
    %c0_19 = arith.constant 0 : index
    %c0_20 = arith.constant 0 : index
    %101 = vector.load %arg2[%c0_19, %c0_20] : memref<2x128xf32, #tpu.memory_space<vmem>>, vector<2x128xf32>
    tpu.vector_store %arg2[%c0_19, %c0_20], %100 {strides = array<i32>} : memref<2x128xf32, #tpu.memory_space<vmem>>, vector<2x128xf32>,
    return
  }
}

</mosaic_0001>

<bundles_post_ra>
// kernel: tpu_custom_call.1
= control target key start
LH: loop header
LB: loop body
LE: loop exit
PB: predicated region body
PF: predicated region fallthrough
CT: control target
= control target key end

     0   :  { %v13_v0 = vlaneseq  ;;  %s412_s0 = inlined_call_operand.vmem [shape: s32[2,10], index: 0, kind: input, shape index: {}]   ;;  %s413_s1 = inlined_call_operand.vmem [shape: f32[12,6], index: 1, kind: input, shape index: {}]   ;;  %s414_s2 = inlined_call_operand.hbm [shape: f32[2,128], index: 2, kind: output, shape index: {}]  }
   0x1   :  { %7 = vsyncpa [#allocation3], 0  ;;  %v333_v1 = vmov 0.0   ;;  %v359_v3 = vld [vmem:[%s412_s0] sm:$0x3]  ;;  %vm64_vm0 = vcmask 1043456  }
   0x2   :  { %286 = vmatprep.subr.mxu0 %v333_v1  ;;  %v16_v2 = vshrl.u32 %v13_v0, 7  ;;  %v56_v8 = vld [vmem:[%s413_s1 + $0x8] sm:$0xf]  ;;  %v55_v9 = vld [vmem:[%s413_s1] sm:$0xff]  ;;  %vm334_vm1 = vmmov 0   ;;  %v335_v10 = vmov 9  }
   0x3   :  { %287 = vmatpush3.msk.msra.mxu0 %vm64_vm0, %v56_v8  ;;  %290 = vmatprep.mubr.msk.f32.mxu0 %vm334_vm1, %v333_v1  ;;  %v372_v11 = vand.u32 127, %v13_v0  ;;  %vm35_vm2 = vcmask 97280   ;;  %vm60_vm6 = vcmask 1041409   ;;  %v336_v35 = vmov 8   ;;  %s337_s0 = smov 3   ;;  %s338_s1 = smov 125  }
   0x4   :  { %v24_v4 = vsub.s32 1, %v16_v2  ;;  %v17_v5 = vsub.s32 0, %v16_v2  ;;  %288 = vmatprep.subr.mxu0 %v333_v1  ;;  %300 = vset.pattern.permute.xlu1 %v335_v10  ;;  %vm189_vm7 = vcmask 42008   ;;  %vm138_vm8 = vcmask 17408   ;;  %s339_s15 = smov [#allocation2]  }
   0x5   :  { %289 = vmatpush3.msra.mxu0 %v55_v9  ;;  %207 = vperm.xlu1 %300, %v359_v3   ;;  %vm50_vm5 = vcmp.eq.s32.totalorder %v372_v11, 11  ;;  %vm162_vm15 = vcmask 1041408   ;;  %vm253_vm0 = vcmp.eq.s32.totalorder %v372_v11, 0  ;;  %vm255_vm1 = vcmp.eq.s32.totalorder %v372_v11, 1  ;;  %s268_s16 = sshll.u32 %s339_s15, 4  ;;  %s269_s16 = int_to_ptr.vmem [resolvable:$true] %s268_s16 }
   0x6   :  { %v25_v6 = vrot.slane %v359_v3, %v24_v4  ;;  %v18_v7 = vrot.slane %v359_v3, %v17_v5  ;;  %v278_v26 = vsel %vm50_vm5, 1.0, %v333_v1  ;;  %301 = vset.pattern.permute.xlu0 %v336_v35  ;;  %s311_s17 = scalar_lea.vmem %s269_s16, 32  ;;  %p316_p1 = scmp.lt.s32.totalorder %s269_s16, %s269_s16 }
   0x7   :  { %p312_p0 = scmp.ne.s32.totalorder %s269_s16, %s311_s17  ;;  %p317_p2 = scmp.lt.s32.totalorder %s311_s17, %s311_s17 }
   0x8   :  { %27 = vbcast.lane.b32.xlu0 %v25_v6, 256 }
   0x9   :  { %p318_p3 = por %p317_p2, %p316_p1 }
   0xb   :  { %p319_p4 = pnand %p318_p3, %p312_p0 }
   0xc   :  { %20 = vbcast.lane.b32.xlu0 %v18_v7, 256 }
  0x7a   :  { %v28_v12 = vpop.permute.xlu0 %27 }
  0x7b   :  { %vm30_vm3 = vcmp.eq.s32.totalorder %v28_v12, %v372_v11 }
  0x7c   :  { %v277_v13 = vsel %vm30_vm3, 1.0, %v333_v1  ;;  %vm259_vm3 = vcmp.eq.s32.totalorder %v372_v11, 3 }
  0x7d   :  { %v43_v14 = vsel %vm35_vm2, %v277_v13, 0.0 }
  0x7e   :  { %v44_v15 = vrot.slane %v43_v14, 4  ;;  %v21_v16 = vpop.permute.xlu0 %20 }
  0x7f   :  { %vm29_vm4 = vcmp.eq.s32.totalorder %v21_v16, %v372_v11 }
  0x80   :  { %v45_v17 = vadd.f32 %v44_v15, %v43_v14  ;;  %v276_v18 = vsel %vm29_vm4, 1.0, %v333_v1  ;;  %v208_v40 = vpop.permute.xlu1 %207 }
  0x81   :  { %v36_v19 = vsel %vm35_vm2, %v276_v18, 0.0  ;;  %vm209_vm9 = vcmp.eq.s32.totalorder %v372_v11, %v208_v40 }
  0x82   :  { %v46_v20 = vrot.slane %v45_v17, 2  ;;  %v37_v21 = vrot.slane %v36_v19, 4  ;;  %v282_v41 = vsel %vm209_vm9, 1.0, %v333_v1 }
  0x84   :  { %v47_v22 = vadd.f32 %v46_v20, %v45_v17  ;;  %v38_v23 = vadd.f32 %v37_v21, %v36_v19 }
  0x86   :  { %v48_v24 = vrot.slane %v47_v22, 1  ;;  %v39_v25 = vrot.slane %v38_v23, 2 }
  0x88   :  { %v49_v27 = vadd.f32 %v48_v24, %v47_v22  ;;  %v40_v28 = vadd.f32 %v39_v25, %v38_v23 }
  0x8a   :  { %v41_v29 = vrot.slane %v40_v28, 1  ;;  %v54_v30 = vadd.f32 %v278_v26, %v49_v27 }
  0x8c   :  { %v42_v31 = vadd.f32 %v41_v29, %v40_v28  ;;  %v59_v33 = vrot.slane %v54_v30, 7 }
  0x8e   :  { %v53_v32 = vadd.f32 %v278_v26, %v42_v31 }
  0x90   :  { %v61_v34 = vsel %vm60_vm6, %v59_v33, %v53_v32 }
  0x91   :  { %291 = vmatmul.mubr.msk.f32.vlgmr.msra.gmra.mxu0 %vm35_vm2, %v61_v34  ;;  %vm257_vm2 = vcmp.eq.s32.totalorder %v372_v11, 2 }
 0x151   :  { %v134_v36 = vpop.f32.mrf.mxu0 }
 0x152   :  { %v190_v37 = vsel %vm189_vm7, %v134_v36, -inf  ;;  %v139_v38 = vsel %vm138_vm8, %v134_v36, -inf }
 0x153   :  { %191 = vmax.xlane.f32.xlu1 %v190_v37  ;;  %140 = vmax.xlane.f32.xlu0 %v139_v38  ;;  %v292_v39 = vpop.f32.mrf.mxu0 }
 0x164   :  { %213 = vrot.lane.b32.xlu1 %v282_v41, %s337_s0 }
 0x169   :  { %234 = vrot.lane.b32.xlu0 %v372_v11, %s337_s0 }
 0x16d   :  { %152 = vperm.xlu0 %301, %v359_v3  }
 0x171   :  { %302 = vset.pattern.permute.xlu0 %v335_v10 }
 0x1dc   :  { %v389_v42 = vpop.xlane.xlu1 %191  ;;  %v141_v43 = vpop.xlane.xlu0 %140 }
 0x1dd   :  { %v193_v44 = vsub.f32 %v134_v36, %v389_v42  ;;  %v142_v45 = vsub.f32 %v134_v36, %v141_v43  ;;  %vm233_vm10 = vcmp.eq.f32.partialorder %v134_v36, %v389_v42  ;;  %vm171_vm11 = vcmp.eq.f32.partialorder %v134_v36, %v141_v43 }
 0x1de   :  { %v172_v56 = vsel %vm171_vm11, %v372_v11, 3 }
 0x1df   :  { %v194_v46 = vmul.f32 1.442695, %v193_v44  ;;  %v143_v47 = vmul.f32 1.442695, %v142_v45  ;;  %v173_v57 = vsel %vm138_vm8, %v172_v56, 2147483647 }
 0x1e0   :  { %v235_v48 = vpop.permute.xlu0 %234  ;;  %v175_v58 = vshra.s32 %v173_v57, 16  ;;  %v214_v60 = vpop.permute.xlu1 %213  ;;  %v174_v5 = vand.u32 65535, %v173_v57 }
 0x1e1   :  { %303 = vpow2.f32 %v194_v46  ;;  %v236_v49 = vsel %vm233_vm10, %v235_v48, 3  ;;  %v216_v61 = vmul.f32 %v214_v60, %v134_v36 }
 0x1e2   :  { %305 = vpow2.f32 %v143_v47  ;;  %v237_v50 = vsel %vm189_vm7, %v236_v49, 2147483647  ;;  %v177_v59 = vcvt.s32.f32 %v175_v58  ;;  %v176_v7 = vcvt.s32.f32 %v174_v5 }
 0x1e3   :  { %v239_v51 = vshra.s32 %v237_v50, 16  ;;  %v238_v9 = vand.u32 65535, %v237_v50 }
 0x1e5   :  { %v241_v52 = vcvt.s32.f32 %v239_v51 }
 0x1e7   :  { %242 = vmin.xlane.f32.xlu0 %v241_v52 }
 0x1e8   :  { %v153_v62 = vpop.permute.xlu0 %152 }
 0x1e9   :  { %vm154_vm12 = vcmp.eq.s32.totalorder %v372_v11, %v153_v62 }
 0x1ea   :  { %v281_v63 = vsel %vm154_vm12, 1.0, %v333_v1  ;;  %v240_v1 = vcvt.s32.f32 %v238_v9 }
 0x1eb   :  { %v157_v3 = vmul.f32 %v281_v63, %v134_v36 }
 0x1ed   :  { %v158_v4 = vsel %vm138_vm8, %v157_v3, 0.0 }
 0x1ee   :  { %v304_v53 = vpop.eup %303 }
 0x1ef   :  { %v306_v54 = vpop.eup %305  ;;  %197 = vrot.lane.b32.xlu1 %v304_v53, %s338_s1 }
 0x1f0   :  { %v145_v55 = vsel %vm138_vm8, %v306_v54, 0.0 }
 0x1f1   :  { %146 = vadd.xlane.f32.xlu0 %v145_v55 }
 0x213   :  { %178 = vmin.xlane.f32.xlu1 %v177_v59 }
 0x224   :  { %218 = vrot.lane.b32.xlu1 %v216_v61, %s338_s1 }
 0x261   :  { %v198_v0 = vpop.permute.xlu1 %197 }
 0x262   :  { %v200_v2 = vsel %vm138_vm8, %v198_v0, 0.0 }
 0x263   :  { %201 = vadd.xlane.f32.xlu0 %v200_v2 }
 0x267   :  { %159 = vadd.xlane.f32.xlu0 %v158_v4 }
 0x270   :  { %v243_v10 = vpop.xlane.xlu0 %242 }
 0x271   :  { %vm244_vm14 = vcmp.eq.f32.partialorder %v241_v52, %v243_v10  ;;  %v249_v34 = vcvt.f32.s32 %v243_v10 }
 0x272   :  { %v245_v14 = vsel %vm244_vm14, %v240_v1, inf }
 0x273   :  { %v250_v41 = vshll.u32 %v249_v34, 16 }
 0x27a   :  { %v147_v15 = vpop.xlane.xlu0 %146 }
 0x27b   :  { %307 = vlog2.f32 %v147_v15 }
 0x288   :  { %v308_v16 = vpop.eup %307 }
 0x289   :  { %v149_v18 = vmul.f32 0.6931472, %v308_v16 }
 0x28b   :  { %v150_v20 = vadd.f32 %v149_v18, %v141_v43 }
 0x29c   :  { %v179_v6 = vpop.xlane.xlu1 %178 }
 0x29d   :  { %vm180_vm13 = vcmp.eq.f32.partialorder %v177_v59, %v179_v6  ;;  %v185_v27 = vcvt.f32.s32 %v179_v6 }
 0x29e   :  { %v181_v8 = vsel %vm180_vm13, %v176_v7, inf }
 0x29f   :  { %182 = vmin.xlane.f32.xlu1 %v181_v8  ;;  %v186_v32 = vshll.u32 %v185_v27, 16 }
 0x2a0   :  { %v219_v12 = vpop.permute.xlu1 %218 }
 0x2a1   :  { %v221_v13 = vsel %vm138_vm8, %v219_v12, 0.0 }
 0x2a2   :  { %222 = vadd.xlane.f32.xlu0 %v221_v13 }
 0x2a6   :  { %246 = vmin.xlane.f32.xlu0 %v245_v14 }
 0x2ec   :  { %v202_v17 = vpop.xlane.xlu0 %201 }
 0x2ed   :  { %309 = vlog2.f32 %v202_v17 }
 0x2f0   :  { %v160_v19 = vpop.xlane.xlu0 %159 }
 0x2f1   :  { %v161_v21 = vsub.f32 %v150_v20, %v160_v19 }
 0x2f3   :  { %v163_v22 = vsel %vm162_vm15, %v161_v21, 0.0 }
 0x2f4   :  { %v164_v23 = vrot.slane %v163_v22, 4 }
 0x2f6   :  { %v165_v26 = vadd.f32 %v164_v23, %v163_v22 }
 0x2f8   :  { %v166_v30 = vrot.slane %v165_v26, 2 }
 0x2fa   :  { %v310_v24 = vpop.eup %309  ;;  %v167_v37 = vadd.f32 %v166_v30, %v165_v26 }
 0x2fb   :  { %v204_v25 = vmul.f32 0.6931472, %v310_v24 }
 0x2fc   :  { %v168_v46 = vrot.slane %v167_v37, 1 }
 0x2fd   :  { %v205_v31 = vadd.f32 %v204_v25, %v389_v42 }
 0x2fe   :  { %v169_v51 = vadd.f32 %v168_v46, %v167_v37 }
 0x300   :  { %v170_v55 = vmul.f32 0.5, %v169_v51 }
 0x328   :  { %v183_v28 = vpop.xlane.xlu1 %182 }
 0x329   :  { %v184_v29 = vcvt.f32.s32 %v183_v28 }
 0x32b   :  { %v223_v33 = vpop.xlane.xlu0 %222  ;;  %v187_v36 = vadd.s32 %v186_v32, %v184_v29 }
 0x32c   :  { %v224_v35 = vsub.f32 %v205_v31, %v223_v33 }
 0x32d   :  { %v188_v44 = vcvt.s32.f32 %v187_v36 }
 0x32e   :  { %v225_v38 = vsel %vm162_vm15, %v224_v35, 0.0 }
 0x32f   :  { %v226_v39 = vrot.slane %v225_v38, 4  ;;  %v247_v40 = vpop.xlane.xlu0 %246  ;;  %v254_v49 = vsel %vm253_vm0, %v188_v44, 0.0 }
 0x330   :  { %v248_v43 = vcvt.f32.s32 %v247_v40 }
 0x331   :  { %v227_v45 = vadd.f32 %v226_v39, %v225_v38 }
 0x332   :  { %v251_v47 = vadd.s32 %v250_v41, %v248_v43 }
 0x333   :  { %v228_v48 = vrot.slane %v227_v45, 2 }
 0x334   :  { %v252_v42 = vcvt.s32.f32 %v251_v47 }
 0x335   :  { %v229_v50 = vadd.f32 %v228_v48, %v227_v45 }
 0x336   :  { %v256_v52 = vsel %vm255_vm1, %v252_v42, %v254_v49 }
 0x337   :  { %v230_v53 = vrot.slane %v229_v50, 1  ;;  %v258_v57 = vsel %vm257_vm2, %v170_v55, %v256_v52 }
 0x339   :  { %v231_v54 = vadd.f32 %v230_v53, %v229_v50 }
 0x33b   :  { %v232_v56 = vmul.f32 0.5, %v231_v54 }
 0x33d   :  { %v260_v58 = vsel %vm259_vm3, %v232_v56, %v258_v57 }
 0x33e   :  { %261 = vst [vmem:[#allocation2] sm:$0x3] %v260_v58 }
 0x33f   :  { %322 = shalt.err (!%p319_p4)
}
 0x340   :  { %271 = dma.vmem_to_hbm [thread:$0]  %s269_s16, 32, %s414_s2, [#allocation3]  }
 0x341   :  { %331 = dma.done.wait [#allocation3], 32  }
 0x342   :  { %332 = vsyncadd [#allocation3], 4294967264 }
 0x343   :  { %275 = vsyncpa [#allocation3], 1 }

</bundles_post_ra>
